<compile_context>
chip_gen: v5e
topology: v5e:2x2
jax: 0.10.0
libtpu: 0.0.40
codegen_flags: <defaults>
</compile_context>

<pallas_src>
import functools

import jax
import jax.numpy as jnp
from jax.experimental import pallas as pl
from jax.experimental.pallas import tpu as pltpu

PACK = 8  # batch rows packed per lane-dense row (8 * 10 = 80 lanes)


def mlp_kernel(x_ref, w1_ref, b1_ref, w2_ref, b2_ref, o_ref):
    # x_ref : (tbp, 80)  -- 8 batch rows of 10 features packed per row
    # w1_ref: (80, 80)   -- kron(I_8, W1^T), VMEM-resident stationary RHS
    # b1_ref: (1, 80)    -- tile(b1, 8)
    # w2_ref: (80, 40)   -- kron(I_8, W2^T)
    # b2_ref: (1, 40)    -- tile(b2, 8)
    # o_ref : (tbp, 40)  -- 8 batch rows of 5 outputs packed per row
    x = x_ref[...]
    h = jnp.dot(x, w1_ref[...],
                precision=jax.lax.Precision.HIGHEST,
                preferred_element_type=jnp.float32)
    h = jnp.maximum(h + b1_ref[...], 0.0)          # bias + ReLU on the VPU
    o = jnp.dot(h, w2_ref[...],
                precision=jax.lax.Precision.HIGHEST,
                preferred_element_type=jnp.float32)
    o_ref[...] = o + b2_ref[...]


@functools.partial(jax.jit, static_argnames=("tb",))
def mlp_forward(x, w1, b1, w2, b2, *, tb=32768):
    """x: (B, 10) f32; w1: (10, 10) [out, in]; b1: (10,); w2: (5, 10); b2: (5,)."""
    B, in_features = x.shape
    hidden = w1.shape[0]
    out_features = w2.shape[0]

    # Batch tiling: tb rounded down to a multiple of 128; keep >= 2 grid steps
    # when the batch allows so the "parallel" axis splits across v7x's 2 TCs.
    tb = max(128, (int(tb) // 128) * 128)
    b_round = pl.cdiv(B, 128) * 128
    num_tiles = pl.cdiv(b_round, tb)
    if num_tiles == 1 and b_round >= 256:
        num_tiles = 2
    tb_eff = pl.cdiv(pl.cdiv(b_round, num_tiles), 128) * 128
    b_pad = num_tiles * tb_eff
    tbp = tb_eff // PACK                      # packed rows per tile

    in_p = PACK * in_features                 # 80
    hid_p = PACK * hidden                     # 80
    out_p = PACK * out_features               # 40

    # Native layout in / native layout out; reshapes are layout-preserving.
    x_pad = jnp.pad(x, ((0, b_pad - B), (0, 0)))            # (b_pad, 10)
    x_packed = x_pad.reshape(b_pad // PACK, in_p)           # (b_pad/8, 80)

    eye = jnp.eye(PACK, dtype=jnp.float32)
    w1_bd = jnp.kron(eye, w1.T)                              # (80, 80)
    w2_bd = jnp.kron(eye, w2.T)                              # (80, 40)
    b1_p = jnp.tile(b1, PACK).reshape(1, hid_p)              # (1, 80)
    b2_p = jnp.tile(b2, PACK).reshape(1, out_p)              # (1, 40)

    out_packed = pl.pallas_call(
        mlp_kernel,
        out_shape=jax.ShapeDtypeStruct((b_pad // PACK, out_p), jnp.float32),
        grid_spec=pl.GridSpec(
            grid=(num_tiles,),
            in_specs=[
                # New batch slab every grid step (double-buffered DMA).
                pl.BlockSpec((tbp, in_p), lambda i: (i, 0)),
                # Weights / biases: same block every step -> VMEM-resident.
                pl.BlockSpec((in_p, hid_p), lambda i: (0, 0)),
                pl.BlockSpec((1, hid_p), lambda i: (0, 0)),
                pl.BlockSpec((hid_p, out_p), lambda i: (0, 0)),
                pl.BlockSpec((1, out_p), lambda i: (0, 0)),
            ],
            out_specs=pl.BlockSpec((tbp, out_p), lambda i: (i, 0)),
        ),
        compiler_params=pltpu.CompilerParams(
            dimension_semantics=("parallel",),
            vmem_limit_bytes=32 * 1024 * 1024,
        ),
    )(x_packed, w1_bd, b1_p, w2_bd, b2_p)

    # Bitcast reshape back to (b_pad, 5), then drop padded rows.
    return out_packed.reshape(b_pad, out_features)[:B]


def _init_params(key):
    # nn.Linear shapes, native PyTorch [out, in] layout:
    #   net1.weight: (10, 10), net1.bias: (10,)
    #   net2.weight: (5, 10),  net2.bias: (5,)
    k1, k2, k3, k4 = jax.random.split(key, 4)
    w1 = jax.random.uniform(k1, (10, 10), jnp.float32, -0.3, 0.3)
    b1 = jax.random.uniform(k2, (10,), jnp.float32, -0.3, 0.3)
    w2 = jax.random.uniform(k3, (5, 10), jnp.float32, -0.3, 0.3)
    b2 = jax.random.uniform(k4, (5,), jnp.float32, -0.3, 0.3)
    return w1, b1, w2, b2


def _reference(x, w1, b1, w2, b2):
    h = jnp.maximum(
        jnp.dot(x, w1.T, precision=jax.lax.Precision.HIGHEST) + b1, 0.0)
    return jnp.dot(h, w2.T, precision=jax.lax.Precision.HIGHEST) + b2


if __name__ == "__main__":
    key = jax.random.PRNGKey(0)
    kx, kx2, kp = jax.random.split(key, 3)
    w1, b1, w2, b2 = _init_params(kp)

    # Small-batch case (pads to a single 128-row tile).
    x = jax.random.normal(kx, (8, 10), jnp.float32)
    out = jax.block_until_ready(mlp_forward(x, w1, b1, w2, b2))
    ref = _reference(x, w1, b1, w2, b2)
    assert out.shape == (8, 5)
    assert jnp.allclose(out, ref, atol=2e-5, rtol=2e-5)

    # Multi-tile case: exercises the batch-tiled grid (tb=128 -> 3 grid steps).
    x2 = jax.random.normal(kx2, (300, 10), jnp.float32)
    out2 = jax.block_until_ready(mlp_forward(x2, w1, b1, w2, b2, tb=128))
    ref2 = _reference(x2, w1, b1, w2, b2)
    assert out2.shape == (300, 5)
    assert jnp.allclose(out2, ref2, atol=2e-5, rtol=2e-5)

    print("KERNEL_OK")
</pallas_src>

<mosaic_0001>
module attributes {stable_mosaic.version = 11 : i64} {
  func.func @mlp_kernel(%arg0: i32, %arg1: memref<16x80xf32, #tpu.memory_space<vmem>>, %arg2: memref<80x80xf32, #tpu.memory_space<vmem>>, %arg3: memref<1x80xf32, #tpu.memory_space<vmem>>, %arg4: memref<80x40xf32, #tpu.memory_space<vmem>>, %arg5: memref<1x40xf32, #tpu.memory_space<vmem>>, %arg6: memref<16x40xf32, #tpu.memory_space<vmem>>) attributes {dimension_semantics = [#tpu.dimension_semantics<parallel>], iteration_bounds = array<i64: 1>, scalar_prefetch = 0 : i64, scratch_operands = 0 : i64, tpu.core_type = #tpu.core_type<tc>, window_params = [{transform_indices = @transform_0, window_bounds = array<i64: 16, 80>}, {pipeline_mode = #tpu.pipeline_mode<synchronous>, transform_indices = @transform_1, window_bounds = array<i64: 80, 80>}, {pipeline_mode = #tpu.pipeline_mode<synchronous>, transform_indices = @transform_2, window_bounds = array<i64: 1, 80>}, {pipeline_mode = #tpu.pipeline_mode<synchronous>, transform_indices = @transform_3, window_bounds = array<i64: 80, 40>}, {pipeline_mode = #tpu.pipeline_mode<synchronous>, transform_indices = @transform_4, window_bounds = array<i64: 1, 40>}, {transform_indices = @transform_5, window_bounds = array<i64: 16, 40>}]} {
    %c0 = arith.constant 0 : index
    %c0_0 = arith.constant 0 : index
    %0 = vector.load %arg1[%c0, %c0_0] : memref<16x80xf32, #tpu.memory_space<vmem>>, vector<16x80xf32>
    %c0_1 = arith.constant 0 : index
    %c0_2 = arith.constant 0 : index
    %1 = vector.load %arg2[%c0_1, %c0_2] : memref<80x80xf32, #tpu.memory_space<vmem>>, vector<80x80xf32>
    %cst = arith.constant dense<0.000000e+00> : vector<16x80xf32>
    %2 = tpu.matmul %0, %1, %cst {dimension_numbers = #tpu.dot_dimension_numbers<[1], [0], [0], [1], [0, 0, 1, 1], [], []>, precision = #tpu.contract_precision<fp32>} : vector<16x80xf32>, vector<80x80xf32>, vector<16x80xf32> -> vector<16x80xf32>
    %c0_3 = arith.constant 0 : index
    %c0_4 = arith.constant 0 : index
    %3 = vector.load %arg3[%c0_3, %c0_4] : memref<1x80xf32, #tpu.memory_space<vmem>>, vector<1x80xf32>
    %4 = vector.broadcast %3 : vector<1x80xf32> to vector<16x80xf32>
    %5 = arith.addf %2, %4 : vector<16x80xf32>
    %cst_5 = arith.constant 0.000000e+00 : f32
    %6 = vector.broadcast %cst_5 : f32 to vector<16x80xf32>
    %7 = arith.maximumf %5, %6 : vector<16x80xf32>
    %c0_6 = arith.constant 0 : index
    %c0_7 = arith.constant 0 : index
    %8 = vector.load %arg4[%c0_6, %c0_7] : memref<80x40xf32, #tpu.memory_space<vmem>>, vector<80x40xf32>
    %cst_8 = arith.constant dense<0.000000e+00> : vector<16x40xf32>
    %9 = tpu.matmul %7, %8, %cst_8 {dimension_numbers = #tpu.dot_dimension_numbers<[1], [0], [0], [1], [0, 0, 1, 1], [], []>, precision = #tpu.contract_precision<fp32>} : vector<16x80xf32>, vector<80x40xf32>, vector<16x40xf32> -> vector<16x40xf32>
    %c0_9 = arith.constant 0 : index
    %c0_10 = arith.constant 0 : index
    %10 = vector.load %arg5[%c0_9, %c0_10] : memref<1x40xf32, #tpu.memory_space<vmem>>, vector<1x40xf32>
    %11 = vector.broadcast %10 : vector<1x40xf32> to vector<16x40xf32>
    %12 = arith.addf %9, %11 : vector<16x40xf32>
    %c0_11 = arith.constant 0 : index
    %c0_12 = arith.constant 0 : index
    %13 = vector.load %arg6[%c0_11, %c0_12] : memref<16x40xf32, #tpu.memory_space<vmem>>, vector<16x40xf32>
    tpu.vector_store %arg6[%c0_11, %c0_12], %12 {strides = array<i32>} : memref<16x40xf32, #tpu.memory_space<vmem>>, vector<16x40xf32>,
    return
  }
  func.func @transform_0(%arg0: i32) -> (i32, i32) {
    %c0_i32 = arith.constant 0 : i32
    %c0_i32_0 = arith.constant 0 : i32
    return %arg0, %c0_i32 : i32, i32
  }
  func.func @transform_1(%arg0: i32) -> (i32, i32) {
    %c0_i32 = arith.constant 0 : i32
    %c0_i32_0 = arith.constant 0 : i32
    %c0_i32_1 = arith.constant 0 : i32
    return %c0_i32, %c0_i32_0 : i32, i32
  }
  func.func @transform_2(%arg0: i32) -> (i32, i32) {
    %c0_i32 = arith.constant 0 : i32
    %c0_i32_0 = arith.constant 0 : i32
    %c0_i32_1 = arith.constant 0 : i32
    return %c0_i32, %c0_i32_0 : i32, i32
  }
  func.func @transform_3(%arg0: i32) -> (i32, i32) {
    %c0_i32 = arith.constant 0 : i32
    %c0_i32_0 = arith.constant 0 : i32
    %c0_i32_1 = arith.constant 0 : i32
    return %c0_i32, %c0_i32_0 : i32, i32
  }
  func.func @transform_4(%arg0: i32) -> (i32, i32) {
    %c0_i32 = arith.constant 0 : i32
    %c0_i32_0 = arith.constant 0 : i32
    %c0_i32_1 = arith.constant 0 : i32
    return %c0_i32, %c0_i32_0 : i32, i32
  }
  func.func @transform_5(%arg0: i32) -> (i32, i32) {
    %c0_i32 = arith.constant 0 : i32
    %c0_i32_0 = arith.constant 0 : i32
    return %arg0, %c0_i32 : i32, i32
  }
}

</mosaic_0001>

<bundles_post_ra>
// kernel: tile.13
= control target key start
LH: loop header
LB: loop body
LE: loop exit
PB: predicated region body
PF: predicated region fallthrough
CT: control target
= control target key end

     0   :  { %s22_s0 = inlined_call_operand.vmem [shape: f32[10], index: 0, kind: input, shape index: {}]   ;;  %s23_s1 = inlined_call_operand.vmem [shape: f32[8,10], index: 1, kind: output, shape index: {}]  }
   0x1   :  { %v4_v0 = vld [vmem:[%s22_s0] ss:$0 sm:$0xff] }
   0x2   :  { %5 = vst [vmem:[%s23_s1] sm:$0xff] %v4_v0 }

// kernel: tile.14
= control target key start
LH: loop header
LB: loop body
LE: loop exit
PB: predicated region body
PF: predicated region fallthrough
CT: control target
= control target key end

     0   :  { %s67_s10 = smov 70   ;;  %s68_s11 = smov 50   ;;  %vm3_vm0 = vcmask 80896   ;;  %vm9_vm1 = vcmask 654896   ;;  %vm15_vm2 = vcmask 572896   ;;  %vm21_vm3 = vcmask 490896   ;;  %s111_s0 = inlined_call_operand.vmem [shape: f32[8,10], index: 0, kind: input, shape index: {}]   ;;  %s112_s1 = inlined_call_operand.vmem [shape: f32[1,80], index: 1, kind: output, shape index: {}]  }
   0x1   :  { %v53_v0 = vld [vmem:[%s111_s0 + $0x7] sm:$0x1]   ;;  %v55_v1 = vld [vmem:[%s111_s0 + $0x5] sm:$0x1]   ;;  %v57_v2 = vld [vmem:[%s111_s0 + $0x3] sm:$0x1]  }
   0x2   :  { %7 = vrot.lane.b32.xlu0 %v53_v0, %s67_s10  ;;  %19 = vrot.lane.b32.xlu1 %v55_v1, %s68_s11  ;;  %s69_s14 = smov 30   ;;  %v54_v3 = vld [vmem:[%s111_s0 + $0x6] sm:$0x1]   ;;  %v56_v4 = vld [vmem:[%s111_s0 + $0x4] sm:$0x1]   ;;  %s70_s21 = smov 60  }
   0x3   :  { %31 = vrot.lane.b32.xlu2 %v57_v2, %s69_s14  ;;  %v58_v5 = vld [vmem:[%s111_s0 + $0x2] sm:$0x1]   ;;  %s71_s22 = smov 40   ;;  %s72_s23 = smov 20   ;;  %v59_v6 = vld [vmem:[%s111_s0 + $0x1] sm:$0x1]  }
   0x4   :  { %s73_s26 = smov 10   ;;  %v2_v7 = vld [vmem:[%s111_s0] sm:$0x1]   ;;  %vm27_vm4 = vcmask 408896   ;;  %vm33_vm5 = vcmask 326896   ;;  %vm39_vm6 = vcmask 244896  }
   0x5   :  { %4 = vst.msk [vmem:[#allocation0] sm:$0x1] %vm3_vm0, %v2_v7   ;;  %vm45_vm7 = vcmask 162896  }
   0xa   :  { %13 = vrot.lane.b32.xlu0 %v54_v3, %s70_s21  ;;  %25 = vrot.lane.b32.xlu1 %v56_v4, %s71_s22 }
   0xb   :  { %37 = vrot.lane.b32.xlu2 %v58_v5, %s72_s23 }
  0x12   :  { %43 = vrot.lane.b32.xlu0 %v59_v6, %s73_s26 }
  0x5d   :  { %v32_v8 = vpop.permute.xlu2 %31  }
  0x65   :  { %v38_v9 = vpop.permute.xlu2 %37  }
  0x74   :  { %v8_v10 = vpop.permute.xlu0 %7   ;;  %v20_v11 = vpop.permute.xlu1 %19  }
  0x75   :  { %10 = vst.msk [vmem:[#allocation0] sm:$0x1] %vm9_vm1, %v8_v10  }
  0x7c   :  { %v14_v12 = vpop.permute.xlu0 %13   ;;  %v26_v13 = vpop.permute.xlu1 %25  }
  0x7d   :  { %16 = vst.msk [vmem:[#allocation0] sm:$0x1] %vm15_vm2, %v14_v12  }
  0x7e   :  { %22 = vst.msk [vmem:[#allocation0] sm:$0x1] %vm21_vm3, %v20_v11  }
  0x7f   :  { %28 = vst.msk [vmem:[#allocation0] sm:$0x1] %vm27_vm4, %v26_v13  }
  0x80   :  { %34 = vst.msk [vmem:[#allocation0] sm:$0x1] %vm33_vm5, %v32_v8  }
  0x81   :  { %40 = vst.msk [vmem:[#allocation0] sm:$0x1] %vm39_vm6, %v38_v9  }
  0x84   :  { %v44_v14 = vpop.permute.xlu0 %43  }
  0x85   :  { %46 = vst.msk [vmem:[#allocation0] sm:$0x1] %vm45_vm7, %v44_v14  }
  0x8c   :  { %v49_v15 = vld [vmem:[#allocation0] sm:$0x1] }
  0x8d   :  { %52 = vst [vmem:[%s112_s1] sm:$0x1] %v49_v15 }

// kernel: tile.18
= control target key start
LH: loop header
LB: loop body
LE: loop exit
PB: predicated region body
PF: predicated region fallthrough
CT: control target
= control target key end

     0   :  { %s22_s0 = inlined_call_operand.vmem [shape: f32[5], index: 0, kind: input, shape index: {}]   ;;  %s23_s1 = inlined_call_operand.vmem [shape: f32[8,5], index: 1, kind: output, shape index: {}]  }
   0x1   :  { %v4_v0 = vld [vmem:[%s22_s0] ss:$0 sm:$0xff] }
   0x2   :  { %5 = vst [vmem:[%s23_s1] sm:$0xff] %v4_v0 }

// kernel: tile.19
= control target key start
LH: loop header
LB: loop body
LE: loop exit
PB: predicated region body
PF: predicated region fallthrough
CT: control target
= control target key end

     0   :  { %s67_s10 = smov 35   ;;  %s68_s11 = smov 25   ;;  %vm3_vm0 = vcmask 39936   ;;  %vm9_vm1 = vcmask 326936   ;;  %vm15_vm2 = vcmask 285936   ;;  %vm21_vm3 = vcmask 244936   ;;  %s111_s0 = inlined_call_operand.vmem [shape: f32[8,5], index: 0, kind: input, shape index: {}]   ;;  %s112_s1 = inlined_call_operand.vmem [shape: f32[1,40], index: 1, kind: output, shape index: {}]  }
   0x1   :  { %v53_v0 = vld [vmem:[%s111_s0 + $0x7] sm:$0x1]   ;;  %v55_v1 = vld [vmem:[%s111_s0 + $0x5] sm:$0x1]   ;;  %v57_v2 = vld [vmem:[%s111_s0 + $0x3] sm:$0x1]  }
   0x2   :  { %7 = vrot.lane.b32.xlu0 %v53_v0, %s67_s10  ;;  %19 = vrot.lane.b32.xlu1 %v55_v1, %s68_s11  ;;  %s69_s14 = smov 15   ;;  %v54_v3 = vld [vmem:[%s111_s0 + $0x6] sm:$0x1]   ;;  %v56_v4 = vld [vmem:[%s111_s0 + $0x4] sm:$0x1]   ;;  %s70_s21 = smov 30  }
   0x3   :  { %31 = vrot.lane.b32.xlu2 %v57_v2, %s69_s14  ;;  %v58_v5 = vld [vmem:[%s111_s0 + $0x2] sm:$0x1]   ;;  %s71_s22 = smov 20   ;;  %s72_s23 = smov 10   ;;  %v59_v6 = vld [vmem:[%s111_s0 + $0x1] sm:$0x1]  }
   0x4   :  { %s73_s26 = smov 5   ;;  %v2_v7 = vld [vmem:[%s111_s0] sm:$0x1]   ;;  %vm27_vm4 = vcmask 203936   ;;  %vm33_vm5 = vcmask 162936   ;;  %vm39_vm6 = vcmask 121936  }
   0x5   :  { %4 = vst.msk [vmem:[#allocation0] sm:$0x1] %vm3_vm0, %v2_v7   ;;  %vm45_vm7 = vcmask 80936  }
   0xa   :  { %13 = vrot.lane.b32.xlu0 %v54_v3, %s70_s21  ;;  %25 = vrot.lane.b32.xlu1 %v56_v4, %s71_s22 }
   0xb   :  { %37 = vrot.lane.b32.xlu2 %v58_v5, %s72_s23 }
  0x12   :  { %43 = vrot.lane.b32.xlu0 %v59_v6, %s73_s26 }
  0x5d   :  { %v32_v8 = vpop.permute.xlu2 %31  }
  0x65   :  { %v38_v9 = vpop.permute.xlu2 %37  }
  0x74   :  { %v8_v10 = vpop.permute.xlu0 %7   ;;  %v20_v11 = vpop.permute.xlu1 %19  }
  0x75   :  { %10 = vst.msk [vmem:[#allocation0] sm:$0x1] %vm9_vm1, %v8_v10  }
  0x7c   :  { %v14_v12 = vpop.permute.xlu0 %13   ;;  %v26_v13 = vpop.permute.xlu1 %25  }
  0x7d   :  { %16 = vst.msk [vmem:[#allocation0] sm:$0x1] %vm15_vm2, %v14_v12  }
  0x7e   :  { %22 = vst.msk [vmem:[#allocation0] sm:$0x1] %vm21_vm3, %v20_v11  }
  0x7f   :  { %28 = vst.msk [vmem:[#allocation0] sm:$0x1] %vm27_vm4, %v26_v13  }
  0x80   :  { %34 = vst.msk [vmem:[#allocation0] sm:$0x1] %vm33_vm5, %v32_v8  }
  0x81   :  { %40 = vst.msk [vmem:[#allocation0] sm:$0x1] %vm39_vm6, %v38_v9  }
  0x84   :  { %v44_v14 = vpop.permute.xlu0 %43  }
  0x85   :  { %46 = vst.msk [vmem:[#allocation0] sm:$0x1] %vm45_vm7, %v44_v14  }
  0x8c   :  { %v49_v15 = vld [vmem:[#allocation0] sm:$0x1] }
  0x8d   :  { %52 = vst [vmem:[%s112_s1] sm:$0x1] %v49_v15 }

// kernel: mlp_forward.1
= control target key start
LH: loop header
LB: loop body
LE: loop exit
PB: predicated region body
PF: predicated region fallthrough
CT: control target
= control target key end

     0   :  { %vm36_vm0 = vcmask 654336   ;;  %vm653_vm1 = vcmask 326656   ;;  %s1018_s1 = inlined_call_operand.vmem [shape: f32[80,80], index: 1, kind: input, shape index: {}]   ;;  %s1019_s2 = inlined_call_operand.vmem [shape: f32[1,80], index: 2, kind: input, shape index: {}]   ;;  %s1020_s0 = inlined_call_operand.vmem [shape: f32[16,80], index: 0, kind: input, shape index: {}]   ;;  %s1021_s3 = inlined_call_operand.vmem [shape: f32[80,40], index: 3, kind: input, shape index: {}]   ;;  %s1022_s4 = inlined_call_operand.vmem [shape: f32[1,40], index: 4, kind: input, shape index: {}]   ;;  %s1023_s5 = inlined_call_operand.vmem [shape: f32[16,40], index: 5, kind: output, shape index: {}]  }
   0x1   :  { %v31_v0 = vld [vmem:[%s1018_s1 + $0x48] sm:$0xff]  ;;  %v30_v1 = vld [vmem:[%s1018_s1 + $0x40] sm:$0xff]  ;;  %v29_v2 = vld [vmem:[%s1018_s1 + $0x38] sm:$0xff] }
   0x2   :  { %v701_v3 = vand.u32 4294901760, %v31_v0  ;;  %v703_v4 = vand.u32 4294901760, %v30_v1  ;;  %v705_v5 = vand.u32 4294901760, %v29_v2  ;;  %v28_v6 = vld [vmem:[%s1018_s1 + $0x30] sm:$0xff]  ;;  %v27_v7 = vld [vmem:[%s1018_s1 + $0x28] sm:$0xff]  ;;  %v26_v8 = vld [vmem:[%s1018_s1 + $0x20] sm:$0xff] }
   0x3   :  { %v716_v9 = vand.u32 4294901760, %v28_v6  ;;  %v718_v10 = vand.u32 4294901760, %v27_v7  ;;  %v720_v11 = vand.u32 4294901760, %v26_v8  ;;  %v25_v12 = vld [vmem:[%s1018_s1 + $0x18] sm:$0xff]  ;;  %v24_v13 = vld [vmem:[%s1018_s1 + $0x10] sm:$0xff]  ;;  %v23_v21 = vld [vmem:[%s1018_s1 + $0x8] sm:$0xff] }
   0x4   :  { %50 = vmatpush.msra.mxu0 %v701_v3  ;;  %v730_v14 = vsub.f32 %v31_v0, %v701_v3  ;;  %v733_v15 = vsub.f32 %v30_v1, %v703_v4  ;;  %215 = vmatpush.msra.mxu3 %v701_v3  ;;  %v737_v16 = vsub.f32 %v29_v2, %v705_v5  ;;  %v739_v17 = vand.u32 4294901760, %v25_v12  ;;  %v22_v28 = vld [vmem:[%s1018_s1] sm:$0xff]  ;;  %v21_v41 = vld [vmem:[%s1020_s0 + $0x8] sm:$0xff] }
   0x5   :  { %v742_v18 = vsub.f32 %v28_v6, %v716_v9  ;;  %v744_v19 = vand.u32 4294901760, %v24_v13  ;;  %v747_v20 = vsub.f32 %v27_v7, %v718_v10  ;;  %v758_v25 = vsub.f32 %v26_v8, %v720_v11  ;;  %v20_v34 = vld [vmem:[%s1020_s0] sm:$0xff] }
   0x6   :  { %52 = vmatpush.msra.mxu0 %v703_v4  ;;  %169 = vmatpush.msra.mxu2 %v730_v14  ;;  %v94_v22 = vand.u32 4294901760, %v730_v14  ;;  %v100_v23 = vand.u32 4294901760, %v733_v15  ;;  %v106_v24 = vand.u32 4294901760, %v737_v16  ;;  %v767_v29 = vsub.f32 %v25_v12, %v739_v17 }
   0x7   :  { %217 = vmatpush.msra.mxu3 %v703_v4  ;;  %v112_v26 = vand.u32 4294901760, %v742_v18  ;;  %v118_v27 = vand.u32 4294901760, %v747_v20  ;;  %v780_v33 = vand.u32 4294901760, %v23_v21  ;;  %v124_v36 = vand.u32 4294901760, %v758_v25 }
   0x8   :  { %54 = vmatpush.msra.mxu0 %v705_v5  ;;  %v95_v30 = vsub.f32 %v730_v14, %v94_v22  ;;  %172 = vmatpush.msra.mxu2 %v733_v15  ;;  %v101_v31 = vsub.f32 %v733_v15, %v100_v23  ;;  %v107_v32 = vsub.f32 %v737_v16, %v106_v24  ;;  %v792_v39 = vand.u32 4294901760, %v22_v28 }
   0x9   :  { %219 = vmatpush.msra.mxu3 %v705_v5  ;;  %v113_v35 = vsub.f32 %v742_v18, %v112_v26  ;;  %v795_v40 = vsub.f32 %v24_v13, %v744_v19  ;;  %v119_v42 = vsub.f32 %v747_v20, %v118_v27  ;;  %v38_v43 = vsel %vm36_vm0, %v20_v34, 0 }
   0xa   :  { %56 = vmatpush.msra.mxu0 %v716_v9  ;;  %v96_v37 = vand.u32 4294901760, %v95_v30  ;;  %v102_v38 = vand.u32 4294901760, %v101_v31  ;;  %175 = vmatpush.msra.mxu2 %v737_v16  ;;  %v108_v44 = vand.u32 4294901760, %v107_v32  ;;  %v130_v45 = vand.u32 4294901760, %v767_v29  ;;  %v343_v30 = vld [vmem:[%s1021_s3 + $0x20] sm:$0xff] }
   0xb   :  { %221 = vmatpush.msra.mxu3 %v716_v9  ;;  %v807_v46 = vand.u32 4294901760, %v38_v43  ;;  %v810_v47 = vsub.f32 %v23_v21, %v780_v33  ;;  %v114_v48 = vand.u32 4294901760, %v113_v35  ;;  %v125_v49 = vsub.f32 %v758_v25, %v124_v36 }
   0xc   :  { %58 = vmatpush.msra.mxu0 %v718_v10  ;;  %97 = vmatpush.msra.mxu1 %v96_v37  ;;  %v41_v50 = vsel %vm36_vm0, %v21_v41, 0  ;;  %v136_v52 = vand.u32 4294901760, %v795_v40  ;;  %v822_v53 = vsub.f32 %v22_v28, %v792_v39  ;;  %v120_v55 = vand.u32 4294901760, %v119_v42  ;;  %v341_v42 = vld [vmem:[%s1021_s3 + $0x10] sm:$0xff] }
   0xd   :  { %178 = vmatpush.msra.mxu2 %v742_v18  ;;  %223 = vmatpush.msra.mxu3 %v718_v10  ;;  %v70_v51 = vsub.f32 %v38_v43, %v807_v46  ;;  %v824_v54 = vand.u32 4294901760, %v41_v50  ;;  %v131_v56 = vsub.f32 %v767_v29, %v130_v45  ;;  %v142_v58 = vand.u32 4294901760, %v810_v47  ;;  %v345_v18 = vld [vmem:[%s1021_s3 + $0x30] sm:$0xff] }
   0xe   :  { %60 = vmatpush.msra.mxu0 %v720_v11  ;;  %103 = vmatpush.msra.mxu1 %v102_v38  ;;  %v126_v60 = vand.u32 4294901760, %v125_v49  ;;  %v137_v62 = vsub.f32 %v795_v40, %v136_v52  ;;  %v148_v63 = vand.u32 4294901760, %v822_v53  ;;  %v944_v34 = vand.u32 4294901760, %v343_v30 }
   0xf   :  { %181 = vmatpush.msra.mxu2 %v747_v20  ;;  %225 = vmatpush.msra.mxu3 %v720_v11  ;;  %v71_v57 = vand.u32 4294901760, %v70_v51  ;;  %v78_v59 = vsub.f32 %v41_v50, %v824_v54  ;;  %v132_v0 = vand.u32 4294901760, %v131_v56  ;;  %v143_v2 = vsub.f32 %v810_v47, %v142_v58 }
  0x10   :  { %62 = vmatpush.msra.mxu0 %v739_v17  ;;  %109 = vmatpush.msra.mxu1 %v108_v44  ;;  %v138_v7 = vand.u32 4294901760, %v137_v62  ;;  %v149_v8 = vsub.f32 %v822_v53, %v148_v63 }
  0x11   :  { %184 = vmatpush.msra.mxu2 %v758_v25  ;;  %227 = vmatpush.msra.mxu3 %v739_v17  ;;  %v72_v61 = vsub.f32 %v70_v51, %v71_v57  ;;  %v79_v6 = vand.u32 4294901760, %v78_v59  ;;  %v144_v12 = vand.u32 4294901760, %v143_v2 }
  0x12   :  { %64 = vmatpush.msra.mxu0 %v744_v19  ;;  %115 = vmatpush.msra.mxu1 %v114_v48  ;;  %v150_v21 = vand.u32 4294901760, %v149_v8  ;;  %v340_v48 = vld [vmem:[%s1021_s3 + $0x8] sm:$0xff] }
  0x13   :  { %187 = vmatpush.msra.mxu2 %v767_v29  ;;  %229 = vmatpush.msra.mxu3 %v744_v19  ;;  %v73_v1 = vand.u32 4294901760, %v72_v61  ;;  %v80_v13 = vsub.f32 %v78_v59, %v79_v6 }
  0x14   :  { %66 = vmatpush.msra.mxu0 %v780_v33  ;;  %121 = vmatpush.msra.mxu1 %v120_v55 }
  0x15   :  { %190 = vmatpush.msra.mxu2 %v795_v40  ;;  %231 = vmatpush.msra.mxu3 %v780_v33  ;;  %v81_v14 = vand.u32 4294901760, %v80_v13  ;;  %v660_v13 = vld [vmem:[%s1019_s2] ss:$0 sm:$0xff] }
  0x16   :  { %68 = vmatpush.msra.mxu0 %v792_v39  ;;  %127 = vmatpush.msra.mxu1 %v126_v60 }
  0x17   :  { %193 = vmatpush.msra.mxu2 %v810_v47  ;;  %74 = vmatmul.f32.vlgmr.msra.gmra.mxu0 %v73_v1 }
  0x18   :  { %256 = vmatpush.msrb.mxu0 %v94_v22  ;;  %133 = vmatpush.msra.mxu1 %v132_v0 }
  0x19   :  { %196 = vmatpush.msra.mxu2 %v822_v53  ;;  %233 = vmatpush.msra.mxu3 %v792_v39 }
  0x1a   :  { %260 = vmatpush.msrb.mxu0 %v100_v23  ;;  %139 = vmatpush.msra.mxu1 %v138_v7  ;;  %v917_v23 = vand.u32 4294901760, %v345_v18 }
  0x1b   :  { %199 = vmatmul.f32.vlgmr.msra.gmra.mxu2 %v70_v51  ;;  %237 = vmatmul.f32.vlgmr.msra.gmra.mxu3 %v71_v57 }
  0x1c   :  { %264 = vmatpush.msrb.mxu0 %v106_v24  ;;  %145 = vmatpush.msra.mxu1 %v144_v12  ;;  %v344_v24 = vld [vmem:[%s1021_s3 + $0x28] sm:$0xff]  ;;  %v930_v28 = vsub.f32 %v345_v18, %v917_v23 }
  0x1d   :  { %v934_v29 = vand.u32 4294901760, %v344_v24 }
  0x1e   :  { %268 = vmatpush.msrb.mxu0 %v112_v26  ;;  %151 = vmatpush.msra.mxu1 %v150_v21 }
  0x1f   :  { %82 = vmatmul.f32.gmra.mxu0 %v81_v14  ;;  %153 = vmatmul.f32.vlgmr.msra.gmra.mxu1 %v807_v46  ;;  %v948_v35 = vsub.f32 %v344_v24, %v934_v29 }
  0x20   :  { %272 = vmatpush.msrb.mxu0 %v118_v27  ;;  %309 = vmatpush.msrb.mxu1 %v701_v3  ;;  %v348_v3 = vld [vmem:[%s1021_s3 + $0x48] sm:$0xff] }
  0x21   :  { %v434_v41 = vand.u32 4294901760, %v948_v35 }
  0x22   :  { %276 = vmatpush.msrb.mxu0 %v124_v36  ;;  %311 = vmatpush.msrb.mxu1 %v703_v4  ;;  %v883_v4 = vand.u32 4294901760, %v348_v3  ;;  %v342_v36 = vld [vmem:[%s1021_s3 + $0x18] sm:$0xff] }
  0x23   :  { %204 = vmatmul.f32.gmra.mxu2 %v78_v59  ;;  %243 = vmatmul.f32.gmra.mxu3 %v79_v6  ;;  %v961_v40 = vand.u32 4294901760, %v342_v36  ;;  %v435_v47 = vsub.f32 %v948_v35, %v434_v41 }
  0x24   :  { %280 = vmatpush.msrb.mxu0 %v130_v45  ;;  %313 = vmatpush.msrb.mxu1 %v705_v5  ;;  %v347_v5 = vld [vmem:[%s1021_s3 + $0x40] sm:$0xff] }
  0x25   :  { %366 = vmatpush.msrb.mxu2 %v883_v4  ;;  %v445_v45 = vsub.f32 %v342_v36, %v961_v40  ;;  %v436_v53 = vand.u32 4294901760, %v435_v47 }
  0x26   :  { %284 = vmatpush.msrb.mxu0 %v136_v52  ;;  %315 = vmatpush.msrb.mxu1 %v716_v9  ;;  %v889_v9 = vsub.f32 %v348_v3, %v883_v4  ;;  %v381_v52 = vand.u32 4294901760, %v340_v48 }
  0x27   :  { %157 = vmatmul.f32.gmra.mxu1 %v824_v54  ;;  %v446_v50 = vand.u32 4294901760, %v445_v45 }
  0x28   :  { %288 = vmatpush.msrb.mxu0 %v142_v58  ;;  %317 = vmatpush.msrb.mxu1 %v718_v10  ;;  %v891_v10 = vand.u32 4294901760, %v347_v5  ;;  %v410_v15 = vand.u32 4294901760, %v889_v9  ;;  %v457_v58 = vsub.f32 %v340_v48, %v381_v52 }
  0x29   :  { %v447_v56 = vsub.f32 %v445_v45, %v446_v50 }
  0x2a   :  { %292 = vmatpush.msrb.mxu0 %v148_v63  ;;  %319 = vmatpush.msrb.mxu1 %v720_v11  ;;  %v346_v11 = vld [vmem:[%s1021_s3 + $0x38] sm:$0xff]  ;;  %v900_v16 = vsub.f32 %v347_v5, %v891_v10  ;;  %v458_v62 = vand.u32 4294901760, %v457_v58 }
  0x2b   :  { %294 = vmatmul.f32.vlgmr.msrb.gmra.mxu0 %v807_v46  ;;  %368 = vmatpush.msrb.mxu2 %v891_v10  ;;  %v448_v60 = vand.u32 4294901760, %v447_v56 }
  0x2c   :  { %321 = vmatpush.msrb.mxu1 %v739_v17  ;;  %v902_v17 = vand.u32 4294901760, %v346_v11  ;;  %485 = vmatpush.msra.mxu0 %v889_v9  ;;  %v416_v20 = vand.u32 4294901760, %v900_v16  ;;  %v459_v1 = vsub.f32 %v457_v58, %v458_v62 }
  0x2e   :  { %323 = vmatpush.msrb.mxu1 %v744_v19  ;;  %v411_v19 = vsub.f32 %v889_v9, %v410_v15  ;;  %v915_v22 = vsub.f32 %v346_v11, %v902_v17  ;;  %488 = vmatpush.msra.mxu0 %v900_v16  ;;  %v417_v26 = vsub.f32 %v900_v16, %v416_v20  ;;  %v460_v6 = vand.u32 4294901760, %v459_v1 }
  0x2f   :  { %370 = vmatpush.msrb.mxu2 %v902_v17 }
  0x30   :  { %325 = vmatpush.msrb.mxu1 %v780_v33  ;;  %v412_v25 = vand.u32 4294901760, %v411_v19  ;;  %v422_v27 = vand.u32 4294901760, %v915_v22  ;;  %491 = vmatpush.msra.mxu0 %v915_v22  ;;  %v418_v31 = vand.u32 4294901760, %v417_v26  ;;  %v428_v33 = vand.u32 4294901760, %v930_v28 }
  0x31   :  { %372 = vmatpush.msrb.mxu2 %v917_v23 }
  0x32   :  { %327 = vmatpush.msrb.mxu1 %v792_v39  ;;  %413 = vmatpush.msrb.mxu3 %v412_v25  ;;  %v423_v32 = vsub.f32 %v915_v22, %v422_v27  ;;  %v429_v38 = vsub.f32 %v930_v28, %v428_v33  ;;  %v959_v39 = vsub.f32 %v343_v30, %v944_v34 }
  0x33   :  { %298 = vmatmul.f32.gmra.mxu0 %v824_v54  ;;  %329 = vmatmul.f32.vlgmr.msrb.gmra.mxu1 %v807_v46  ;;  %v971_v46 = vand.u32 4294901760, %v341_v42 }
  0x34   :  { %531 = vmatpush.msra.mxu1 %v883_v4  ;;  %494 = vmatpush.msra.mxu0 %v930_v28  ;;  %v424_v37 = vand.u32 4294901760, %v423_v32  ;;  %v430_v43 = vand.u32 4294901760, %v429_v38  ;;  %v440_v44 = vand.u32 4294901760, %v959_v39 }
  0x35   :  { %374 = vmatpush.msrb.mxu2 %v934_v29  ;;  %419 = vmatpush.msrb.mxu3 %v418_v31  ;;  %v451_v51 = vsub.f32 %v341_v42, %v971_v46 }
  0x36   :  { %533 = vmatpush.msra.mxu1 %v891_v10  ;;  %497 = vmatpush.msra.mxu0 %v948_v35  ;;  %v441_v49 = vsub.f32 %v959_v39, %v440_v44 }
  0x37   :  { %425 = vmatpush.msrb.mxu3 %v424_v37  ;;  %376 = vmatpush.msrb.mxu2 %v944_v34  ;;  %v452_v57 = vand.u32 4294901760, %v451_v51 }
  0x38   :  { %535 = vmatpush.msra.mxu1 %v902_v17  ;;  %500 = vmatpush.msra.mxu0 %v959_v39  ;;  %v442_v55 = vand.u32 4294901760, %v441_v49 }
  0x39   :  { %431 = vmatpush.msrb.mxu3 %v430_v43  ;;  %378 = vmatpush.msrb.mxu2 %v961_v40  ;;  %v453_v61 = vsub.f32 %v451_v51, %v452_v57 }
  0x3a   :  { %537 = vmatpush.msra.mxu1 %v917_v23  ;;  %503 = vmatpush.msra.mxu0 %v445_v45 }
  0x3b   :  { %333 = vmatmul.f32.gmra.mxu1 %v824_v54  ;;  %v339_v54 = vld [vmem:[%s1021_s3] sm:$0xff]  ;;  %380 = vmatpush.msrb.mxu2 %v971_v46  ;;  %v454_v0 = vand.u32 4294901760, %v453_v61 }
  0x3c   :  { %539 = vmatpush.msra.mxu1 %v934_v29  ;;  %437 = vmatpush.msrb.mxu3 %v436_v53  ;;  %v383_v59 = vand.u32 4294901760, %v339_v54 }
  0x3d   :  { %506 = vmatpush.msra.mxu0 %v451_v51  ;;  %382 = vmatpush.msrb.mxu2 %v381_v52 }
  0x3e   :  { %541 = vmatpush.msra.mxu1 %v944_v34  ;;  %443 = vmatpush.msrb.mxu3 %v442_v55  ;;  %v463_v63 = vsub.f32 %v339_v54, %v383_v59 }
  0x3f   :  { %509 = vmatpush.msra.mxu0 %v457_v58  ;;  %384 = vmatpush.msrb.mxu2 %v383_v59 }
  0x40   :  { %543 = vmatpush.msra.mxu1 %v961_v40  ;;  %449 = vmatpush.msrb.mxu3 %v448_v60  ;;  %v464_v2 = vand.u32 4294901760, %v463_v63 }
  0x41   :  { %512 = vmatpush.msra.mxu0 %v463_v63  ;;  %572 = vmatpush.msra.mxu2 %v410_v15 }
  0x42   :  { %545 = vmatpush.msra.mxu1 %v971_v46  ;;  %455 = vmatpush.msrb.mxu3 %v454_v0  ;;  %v465_v7 = vsub.f32 %v463_v63, %v464_v2 }
  0x43   :  { %576 = vmatpush.msra.mxu2 %v416_v20 }
  0x44   :  { %547 = vmatpush.msra.mxu1 %v381_v52  ;;  %461 = vmatpush.msrb.mxu3 %v460_v6  ;;  %v466_v8 = vand.u32 4294901760, %v465_v7 }
  0x45   :  { %580 = vmatpush.msra.mxu2 %v422_v27 }
  0x46   :  { %549 = vmatpush.msra.mxu1 %v383_v59  ;;  %467 = vmatpush.msrb.mxu3 %v466_v8 }
  0x47   :  { %584 = vmatpush.msra.mxu2 %v428_v33 }
  0x48   :  { %625 = vmatpush.msra.mxu3 %v883_v4 }
  0x49   :  { %588 = vmatpush.msra.mxu2 %v434_v41 }
  0x4a   :  { %627 = vmatpush.msra.mxu3 %v891_v10 }
  0x4b   :  { %592 = vmatpush.msra.mxu2 %v440_v44 }
  0x4c   :  { %629 = vmatpush.msra.mxu3 %v902_v17 }
  0x4d   :  { %596 = vmatpush.msra.mxu2 %v446_v50 }
  0x4e   :  { %631 = vmatpush.msra.mxu3 %v917_v23 }
  0x4f   :  { %600 = vmatpush.msra.mxu2 %v452_v57 }
  0x50   :  { %633 = vmatpush.msra.mxu3 %v934_v29 }
  0x51   :  { %604 = vmatpush.msra.mxu2 %v458_v62 }
  0x52   :  { %635 = vmatpush.msra.mxu3 %v944_v34 }
  0x53   :  { %608 = vmatpush.msra.mxu2 %v464_v2 }
  0x54   :  { %637 = vmatpush.msra.mxu3 %v961_v40 }
  0x56   :  { %639 = vmatpush.msra.mxu3 %v971_v46  ;;  %v661_v46 = vld [vmem:[%s1022_s4] ss:$0 sm:$0xff] }
  0x58   :  { %641 = vmatpush.msra.mxu3 %v381_v52 }
  0x5a   :  { %643 = vmatpush.msra.mxu3 %v383_v59 }
  0x94   :  { %v75_v12 = vpop.f32.mrf.mxu0 }
  0x95   :  { %v76_v3 = vadd.f32 %v660_v13, %v75_v12 }
  0x9c   :  { %v154_v21 = vpop.f32.mrf.mxu1  ;;  %v83_v14 = vpop.f32.mrf.mxu0 }
  0x9d   :  { %v155_v5 = vadd.f32 %v154_v21, %v76_v3  ;;  %v84_v11 = vadd.f32 %v660_v13, %v83_v14 }
  0x9e   :  { %v200_v4 = vpop.f32.mrf.mxu2  ;;  %v238_v10 = vpop.f32.mrf.mxu3 }
  0x9f   :  { %v201_v15 = vadd.f32 %v200_v4, %v155_v5 }
  0xa1   :  { %v239_v17 = vadd.f32 %v238_v10, %v201_v15 }
  0xa4   :  { %v158_v9 = vpop.f32.mrf.mxu1 }
  0xa5   :  { %v159_v18 = vadd.f32 %v158_v9, %v84_v11 }
  0xa6   :  { %v205_v19 = vpop.f32.mrf.mxu2  ;;  %v244_v25 = vpop.f32.mrf.mxu3 }
  0xa7   :  { %v206_v23 = vadd.f32 %v205_v19, %v159_v18 }
  0xa8   :  { %v295_v16 = vpop.f32.mrf.mxu0 }
  0xa9   :  { %v296_v20 = vadd.f32 %v295_v16, %v239_v17  ;;  %v245_v28 = vadd.f32 %v244_v25, %v206_v23 }
  0xb0   :  { %v330_v22 = vpop.f32.mrf.mxu1  ;;  %v299_v27 = vpop.f32.mrf.mxu0 }
  0xb1   :  { %v331_v24 = vadd.f32 %v330_v22, %v296_v20  ;;  %v300_v31 = vadd.f32 %v299_v27, %v245_v28 }
  0xb3   :  { %v337_v26 = vmax.f32 %v331_v24, 0.0 }
  0xb5   :  { %v354_v29 = vsel %vm36_vm0, %v337_v26, 0 }
  0xb6   :  { %v385_v30 = vand.u32 4294901760, %v354_v29 }
  0xb8   :  { %v386_v32 = vsub.f32 %v354_v29, %v385_v30  ;;  %v334_v33 = vpop.f32.mrf.mxu1  ;;  %469 = vmatmul.f32.vlgmr.msrb.gmra.mxu3 %v385_v30 }
  0xb9   :  { %v335_v34 = vadd.f32 %v334_v33, %v300_v31 }
  0xba   :  { %515 = vmatmul.f32.vlgmr.msra.gmra.mxu0 %v386_v32  ;;  %v387_v35 = vand.u32 4294901760, %v386_v32 }
  0xbb   :  { %v338_v36 = vmax.f32 %v335_v34, 0.0 }
  0xbc   :  { %553 = vmatmul.f32.vlgmr.msra.gmra.mxu1 %v387_v35  ;;  %v388_v37 = vsub.f32 %v386_v32, %v387_v35 }
  0xbd   :  { %v357_v38 = vsel %vm36_vm0, %v338_v36, 0 }
  0xbe   :  { %v393_v39 = vand.u32 4294901760, %v357_v38  ;;  %v389_v40 = vand.u32 4294901760, %v388_v37 }
  0xc0   :  { %390 = vmatmul.f32.vlgmr.msrb.gmra.mxu2 %v389_v40  ;;  %473 = vmatmul.f32.gmra.mxu3 %v393_v39  ;;  %v394_v41 = vsub.f32 %v357_v38, %v393_v39 }
  0xc2   :  { %520 = vmatmul.f32.gmra.mxu0 %v394_v41  ;;  %v395_v42 = vand.u32 4294901760, %v394_v41 }
  0xc4   :  { %559 = vmatmul.f32.gmra.mxu1 %v395_v42  ;;  %v396_v43 = vsub.f32 %v394_v41, %v395_v42 }
  0xc6   :  { %v397_v44 = vand.u32 4294901760, %v396_v43 }
  0xc8   :  { %398 = vmatmul.f32.gmra.mxu2 %v397_v44  ;;  %645 = vmatmul.f32.vlgmr.msra.gmra.mxu3 %v385_v30 }
  0xd0   :  { %610 = vmatmul.f32.vlgmr.msra.gmra.mxu2 %v385_v30  ;;  %649 = vmatmul.f32.gmra.mxu3 %v393_v39 }
  0xd8   :  { %614 = vmatmul.f32.gmra.mxu2 %v393_v39 }
 0x137   :  { %v516_v51 = vpop.f32.mrf.mxu0 }
 0x139   :  { %v554_v55 = vpop.f32.mrf.mxu1 }
 0x13b   :  { %v470_v45 = vpop.f32.mrf.mxu3 }
 0x13f   :  { %v521_v61 = vpop.f32.mrf.mxu0 }
 0x141   :  { %v560_v0 = vpop.f32.mrf.mxu1 }
 0x143   :  { %v391_v47 = vpop.f32.mrf.mxu2  ;;  %v474_v49 = vpop.f32.mrf.mxu3 }
 0x144   :  { %v392_v48 = vadd.f32 %v661_v46, %v391_v47 }
 0x146   :  { %v471_v50 = vadd.f32 %v470_v45, %v392_v48 }
 0x148   :  { %v517_v54 = vadd.f32 %v516_v51, %v471_v50 }
 0x14a   :  { %v555_v57 = vadd.f32 %v554_v55, %v517_v54 }
 0x14b   :  { %v399_v52 = vpop.f32.mrf.mxu2  ;;  %v646_v58 = vpop.f32.mrf.mxu3 }
 0x14c   :  { %v400_v53 = vadd.f32 %v661_v46, %v399_v52 }
 0x14e   :  { %v475_v56 = vadd.f32 %v474_v49, %v400_v53 }
 0x150   :  { %v522_v63 = vadd.f32 %v521_v61, %v475_v56 }
 0x152   :  { %v561_v1 = vadd.f32 %v560_v0, %v522_v63 }
 0x153   :  { %v611_v59 = vpop.f32.mrf.mxu2  ;;  %v650_v7 = vpop.f32.mrf.mxu3 }
 0x154   :  { %v612_v60 = vadd.f32 %v611_v59, %v555_v57 }
 0x156   :  { %v647_v62 = vadd.f32 %v646_v58, %v612_v60 }
 0x158   :  { %654 = vst.msk [vmem:[%s1023_s5] sm:$0xff] %vm653_vm1, %v647_v62 }
 0x15b   :  { %v615_v2 = vpop.f32.mrf.mxu2 }
 0x15c   :  { %v616_v6 = vadd.f32 %v615_v2, %v561_v1 }
 0x15e   :  { %v651_v8 = vadd.f32 %v650_v7, %v616_v6 }
 0x160   :  { %655 = vst.msk [vmem:[%s1023_s5 + $0x8] sm:$0xff] %vm653_vm1, %v651_v8 }

</bundles_post_ra>
